<compile_context>
chip_gen: v7x
topology: tpu7x:2x2x1
jax: 0.10.0
libtpu: 0.0.40
codegen_flags: <defaults>
</compile_context>

<pallas_src>
import functools
import math

import jax
import jax.numpy as jnp
import numpy as np
from jax.experimental import pallas as pl
from jax.experimental.pallas import tpu as pltpu


def _rule_kernel(sel_ref, x_ref, o_ref, *, ms, offs):
    """sel_ref: (N, R) int32 -- sel[k, r] = membership index of input k for rule r.
    x_ref  : (TB, M) float  -- concatenated inputs, batch on sublanes.
    o_ref  : (TB, R) float  -- rule strengths in PyTorch (B, R) ordering.
    """
    x = x_ref[...]                        # (TB, M) loaded once
    sel = sel_ref[...]                    # (N, R)
    tb = x.shape[0]
    r = sel.shape[1]

    out = None
    for k, m in enumerate(ms):
        off = offs[k]
        sel_k = sel[k:k + 1, :]                                   # (1, R)
        # Start with column 0 lane-broadcast to all R rule columns,
        # then select in columns 1..m-1 where the rule uses them.
        gathered = jnp.broadcast_to(x[:, off:off + 1], (tb, r))   # (TB, R)
        for j in range(1, m):
            gathered = jnp.where(sel_k == j, x[:, off + j:off + j + 1], gathered)
        out = gathered if out is None else out * gathered

    o_ref[...] = out.astype(o_ref.dtype)  # single full-tile store


def _pick_block_b(B, R, M):
    """Batch (sublane) tile size."""
    lanes = lambda c: ((max(int(c), 1) + 127) // 128) * 128
    # Rough VMEM bytes per batch row: double-buffered in/out pipeline buffers
    # plus ~4 compiler temporaries of the (TB, R_padded) working set.
    bytes_per_row = 4 * (2 * lanes(M) + 6 * lanes(R))
    tb = min(
        (16 * 1024 * 1024) // bytes_per_row,        # keep VMEM comfortably bounded
        max(256, (1 * 1024 * 1024) // (4 * R)),     # aim ~>=1 MiB useful output/step
        4096,
    )
    if B > 8:
        tb = min(tb, (B + 1) // 2)                  # >=2 grid steps -> both v7x TCs busy
    if tb >= B:
        return B                                    # one block == full batch (always legal)
    return max(8, ((tb + 7) // 8) * 8)              # sublane tile multiple of 8


def rule_layer(inputs, *, block_b=None):
    """S-ANFIS rule layer.

    inputs : list of N arrays, each (B, m_k) float32, 2 <= N <= 8.
    returns: (B, prod(m_k)) float32, identical ordering to the PyTorch module.
    """
    n = len(inputs)
    if not (2 <= n <= 8):
        raise ValueError(
            f"Model supports only 2..8 input variables but {n} were given.")

    B = int(inputs[0].shape[0])
    dtype = inputs[0].dtype
    ms = tuple(int(x.shape[1]) for x in inputs)
    offs = tuple(int(o) for o in np.cumsum((0,) + ms[:-1]))
    M = int(sum(ms))
    R = int(math.prod(ms))

    # Static selection table: sel[k, r] = i_k for rule r (input 0 slowest).
    strides = [math.prod(ms[k + 1:]) for k in range(n)]
    rr = np.arange(R)
    sel = np.stack([(rr // strides[k]) % ms[k] for k in range(n)]).astype(np.int32)

    if block_b is None:
        tb = _pick_block_b(B, R, M)
    else:
        tb = min(int(block_b), B)
        if tb < B and tb % 8 != 0:
            raise ValueError("block_b must be a multiple of 8 (sublane tile).")

    grid = (pl.cdiv(B, tb),)

    # One concatenated input -> a single DMA per grid step (inputs are tiny).
    xcat = jnp.concatenate(inputs, axis=1)           # (B, M)

    out = pl.pallas_call(
        functools.partial(_rule_kernel, ms=ms, offs=offs),
        out_shape=jax.ShapeDtypeStruct((B, R), dtype),
        grid_spec=pl.GridSpec(
            grid=grid,
            in_specs=[
                pl.BlockSpec((n, R), lambda i: (0, 0)),    # constant block: DMA'd once
                pl.BlockSpec((tb, M), lambda i: (i, 0)),
            ],
            out_specs=pl.BlockSpec((tb, R), lambda i: (i, 0)),
        ),
        compiler_params=pltpu.CompilerParams(
            dimension_semantics=("parallel",),
            vmem_limit_bytes=32 * 1024 * 1024,
        ),
    )(jnp.asarray(sel), xcat)

    return out


if __name__ == "__main__":
    key = jax.random.PRNGKey(0)
    k0, k1, k2, k3, k4 = jax.random.split(key, 5)

    B = 300  # not a multiple of the batch tile -> exercises the ragged last block

    # --- 3-input case: m = (4, 3, 2) -> 24 rules ---------------------------
    x0 = jax.random.uniform(k0, (B, 4), dtype=jnp.float32)
    x1 = jax.random.uniform(k1, (B, 3), dtype=jnp.float32)
    x2 = jax.random.uniform(k2, (B, 2), dtype=jnp.float32)

    out3 = jax.block_until_ready(rule_layer([x0, x1, x2]))

    a0, a1, a2 = np.asarray(x0), np.asarray(x1), np.asarray(x2)
    ref3 = (a0[:, :, None, None]
            * a1[:, None, :, None]
            * a2[:, None, None, :]).reshape(B, -1)
    np.testing.assert_allclose(np.asarray(out3), ref3, rtol=1e-6, atol=1e-7)

    # --- 2-input case: m = (5, 3) -> 15 rules ------------------------------
    y0 = jax.random.uniform(k3, (B, 5), dtype=jnp.float32)
    y1 = jax.random.uniform(k4, (B, 3), dtype=jnp.float32)

    out2 = jax.block_until_ready(rule_layer([y0, y1]))

    b0, b1 = np.asarray(y0), np.asarray(y1)
    ref2 = (b0[:, :, None] * b1[:, None, :]).reshape(B, -1)
    np.testing.assert_allclose(np.asarray(out2), ref2, rtol=1e-6, atol=1e-7)

    print("KERNEL_OK")
</pallas_src>

<mosaic_0001>
module attributes {stable_mosaic.version = 11 : i64} {
  func.func @_rule_kernel(%arg0: i32, %arg1: memref<3x24xi32, #tpu.memory_space<vmem>>, %arg2: memref<152x9xf32, #tpu.memory_space<vmem>>, %arg3: memref<152x24xf32, #tpu.memory_space<vmem>>) attributes {dimension_semantics = [#tpu.dimension_semantics<parallel>], iteration_bounds = array<i64: 2>, scalar_prefetch = 0 : i64, scratch_operands = 0 : i64, tpu.core_type = #tpu.core_type<tc>, window_params = [{pipeline_mode = #tpu.pipeline_mode<synchronous>, transform_indices = @transform_0, window_bounds = array<i64: 3, 24>}, {transform_indices = @transform_1, window_bounds = array<i64: 152, 9>}, {transform_indices = @transform_2, window_bounds = array<i64: 152, 24>}]} {
    %c0 = arith.constant 0 : index
    %c0_0 = arith.constant 0 : index
    %0 = vector.load %arg2[%c0, %c0_0] : memref<152x9xf32, #tpu.memory_space<vmem>>, vector<152x9xf32>
    %c0_1 = arith.constant 0 : index
    %c0_2 = arith.constant 0 : index
    %1 = vector.load %arg1[%c0_1, %c0_2] : memref<3x24xi32, #tpu.memory_space<vmem>>, vector<3x24xi32>
    %2 = vector.extract_strided_slice %1 {offsets = [0, 0], sizes = [1, 24], strides = [1, 1]} : vector<3x24xi32> to vector<1x24xi32>
    %3 = vector.extract_strided_slice %0 {offsets = [0, 0], sizes = [152, 1], strides = [1, 1]} : vector<152x9xf32> to vector<152x1xf32>
    %4 = vector.shape_cast %3 : vector<152x1xf32> to vector<152x1xf32>
    %5 = vector.broadcast %4 : vector<152x1xf32> to vector<152x24xf32>
    %c1_i32 = arith.constant 1 : i32
    %6 = vector.broadcast %c1_i32 : i32 to vector<1x24xi32>
    %7 = arith.cmpi eq, %2, %6 : vector<1x24xi32>
    %8 = vector.extract_strided_slice %0 {offsets = [0, 1], sizes = [152, 1], strides = [1, 1]} : vector<152x9xf32> to vector<152x1xf32>
    %9 = vector.shape_cast %7 : vector<1x24xi1> to vector<1x24xi1>
    %10 = vector.broadcast %9 : vector<1x24xi1> to vector<152x24xi1>
    %11 = vector.shape_cast %8 : vector<152x1xf32> to vector<152x1xf32>
    %12 = vector.broadcast %11 : vector<152x1xf32> to vector<152x24xf32>
    %13 = arith.select %10, %12, %5 : vector<152x24xi1>, vector<152x24xf32>
    %c2_i32 = arith.constant 2 : i32
    %14 = vector.broadcast %c2_i32 : i32 to vector<1x24xi32>
    %15 = arith.cmpi eq, %2, %14 : vector<1x24xi32>
    %16 = vector.extract_strided_slice %0 {offsets = [0, 2], sizes = [152, 1], strides = [1, 1]} : vector<152x9xf32> to vector<152x1xf32>
    %17 = vector.shape_cast %15 : vector<1x24xi1> to vector<1x24xi1>
    %18 = vector.broadcast %17 : vector<1x24xi1> to vector<152x24xi1>
    %19 = vector.shape_cast %16 : vector<152x1xf32> to vector<152x1xf32>
    %20 = vector.broadcast %19 : vector<152x1xf32> to vector<152x24xf32>
    %21 = arith.select %18, %20, %13 : vector<152x24xi1>, vector<152x24xf32>
    %c3_i32 = arith.constant 3 : i32
    %22 = vector.broadcast %c3_i32 : i32 to vector<1x24xi32>
    %23 = arith.cmpi eq, %2, %22 : vector<1x24xi32>
    %24 = vector.extract_strided_slice %0 {offsets = [0, 3], sizes = [152, 1], strides = [1, 1]} : vector<152x9xf32> to vector<152x1xf32>
    %25 = vector.shape_cast %23 : vector<1x24xi1> to vector<1x24xi1>
    %26 = vector.broadcast %25 : vector<1x24xi1> to vector<152x24xi1>
    %27 = vector.shape_cast %24 : vector<152x1xf32> to vector<152x1xf32>
    %28 = vector.broadcast %27 : vector<152x1xf32> to vector<152x24xf32>
    %29 = arith.select %26, %28, %21 : vector<152x24xi1>, vector<152x24xf32>
    %30 = vector.extract_strided_slice %1 {offsets = [1, 0], sizes = [1, 24], strides = [1, 1]} : vector<3x24xi32> to vector<1x24xi32>
    %31 = vector.extract_strided_slice %0 {offsets = [0, 4], sizes = [152, 1], strides = [1, 1]} : vector<152x9xf32> to vector<152x1xf32>
    %32 = vector.shape_cast %31 : vector<152x1xf32> to vector<152x1xf32>
    %33 = vector.broadcast %32 : vector<152x1xf32> to vector<152x24xf32>
    %c1_i32_3 = arith.constant 1 : i32
    %34 = vector.broadcast %c1_i32_3 : i32 to vector<1x24xi32>
    %35 = arith.cmpi eq, %30, %34 : vector<1x24xi32>
    %36 = vector.extract_strided_slice %0 {offsets = [0, 5], sizes = [152, 1], strides = [1, 1]} : vector<152x9xf32> to vector<152x1xf32>
    %37 = vector.shape_cast %35 : vector<1x24xi1> to vector<1x24xi1>
    %38 = vector.broadcast %37 : vector<1x24xi1> to vector<152x24xi1>
    %39 = vector.shape_cast %36 : vector<152x1xf32> to vector<152x1xf32>
    %40 = vector.broadcast %39 : vector<152x1xf32> to vector<152x24xf32>
    %41 = arith.select %38, %40, %33 : vector<152x24xi1>, vector<152x24xf32>
    %c2_i32_4 = arith.constant 2 : i32
    %42 = vector.broadcast %c2_i32_4 : i32 to vector<1x24xi32>
    %43 = arith.cmpi eq, %30, %42 : vector<1x24xi32>
    %44 = vector.extract_strided_slice %0 {offsets = [0, 6], sizes = [152, 1], strides = [1, 1]} : vector<152x9xf32> to vector<152x1xf32>
    %45 = vector.shape_cast %43 : vector<1x24xi1> to vector<1x24xi1>
    %46 = vector.broadcast %45 : vector<1x24xi1> to vector<152x24xi1>
    %47 = vector.shape_cast %44 : vector<152x1xf32> to vector<152x1xf32>
    %48 = vector.broadcast %47 : vector<152x1xf32> to vector<152x24xf32>
    %49 = arith.select %46, %48, %41 : vector<152x24xi1>, vector<152x24xf32>
    %50 = arith.mulf %29, %49 : vector<152x24xf32>
    %51 = vector.extract_strided_slice %1 {offsets = [2, 0], sizes = [1, 24], strides = [1, 1]} : vector<3x24xi32> to vector<1x24xi32>
    %52 = vector.extract_strided_slice %0 {offsets = [0, 7], sizes = [152, 1], strides = [1, 1]} : vector<152x9xf32> to vector<152x1xf32>
    %53 = vector.shape_cast %52 : vector<152x1xf32> to vector<152x1xf32>
    %54 = vector.broadcast %53 : vector<152x1xf32> to vector<152x24xf32>
    %c1_i32_5 = arith.constant 1 : i32
    %55 = vector.broadcast %c1_i32_5 : i32 to vector<1x24xi32>
    %56 = arith.cmpi eq, %51, %55 : vector<1x24xi32>
    %57 = vector.extract_strided_slice %0 {offsets = [0, 8], sizes = [152, 1], strides = [1, 1]} : vector<152x9xf32> to vector<152x1xf32>
    %58 = vector.shape_cast %56 : vector<1x24xi1> to vector<1x24xi1>
    %59 = vector.broadcast %58 : vector<1x24xi1> to vector<152x24xi1>
    %60 = vector.shape_cast %57 : vector<152x1xf32> to vector<152x1xf32>
    %61 = vector.broadcast %60 : vector<152x1xf32> to vector<152x24xf32>
    %62 = arith.select %59, %61, %54 : vector<152x24xi1>, vector<152x24xf32>
    %63 = arith.mulf %50, %62 : vector<152x24xf32>
    %c0_6 = arith.constant 0 : index
    %c0_7 = arith.constant 0 : index
    %64 = vector.load %arg3[%c0_6, %c0_7] : memref<152x24xf32, #tpu.memory_space<vmem>>, vector<152x24xf32>
    tpu.vector_store %arg3[%c0_6, %c0_7], %63 {strides = array<i32>} : memref<152x24xf32, #tpu.memory_space<vmem>>, vector<152x24xf32>,
    return
  }
  func.func @transform_0(%arg0: i32) -> (i32, i32) {
    %c0_i32 = arith.constant 0 : i32
    %c0_i32_0 = arith.constant 0 : i32
    %c0_i32_1 = arith.constant 0 : i32
    return %c0_i32, %c0_i32_0 : i32, i32
  }
  func.func @transform_1(%arg0: i32) -> (i32, i32) {
    %c0_i32 = arith.constant 0 : i32
    %c0_i32_0 = arith.constant 0 : i32
    return %arg0, %c0_i32 : i32, i32
  }
  func.func @transform_2(%arg0: i32) -> (i32, i32) {
    %c0_i32 = arith.constant 0 : i32
    %c0_i32_0 = arith.constant 0 : i32
    return %arg0, %c0_i32 : i32, i32
  }
}

</mosaic_0001>

<bundles_post_ra>
// kernel: tpu_custom_call.1
= control target key start
LH: loop header
LB: loop body
LE: loop exit
PB: predicated region body
PF: predicated region fallthrough
CT: control target
= control target key end

     0   :  { %s1210_s9 = smov 0   ;;  %s2136_s0 = inlined_call_operand.vmem [shape: s32[3,24], index: 0, kind: input, shape index: {}]   ;;  %s2137_s1 = inlined_call_operand.vmem [shape: f32[300,9], index: 1, kind: input, shape index: {}]   ;;  %s2138_s2 = inlined_call_operand.vmem [shape: f32[300,24], index: 2, kind: output, shape index: {}]  }
   0x1 LB: > { %s1134_s10 = sadd.s32 4294967295, %s1184_s9   ;;  %p1138_p0 = scmp.ge.s32.totalorder %s1184_s9, 1  ;;  %s1184_s9 = sphi %s1210_s9, %s12_s9  }
   0x2   : > { %p113_p1 = scmp.lt.s32.totalorder %s1184_s9, 3 }
   0x4   : > { %p114_p2 = pnand %p1138_p0, %p113_p1 }
   0x6   : > { %117 = sbr.rel (%p114_p2) target bundleno = 513 (0x201), region = 28 }
   0xd   : > { %s135_s11 = smul.u32 19, %s1134_s10  ;;  %v2139_v0 = vmov 0   ;;  %v1187_v20 = vmov 1   ;;  %v1188_v21 = vmov 2   ;;  %v1189_v22 = vmov 3  }
   0xe   : > { %1161 = vset.pattern.permute.xlu1 %v2139_v0  ;;  %1160 = vset.pattern.permute.xlu0 %v2139_v0  ;;  %v1190_v36 = vmov 4   ;;  %v1191_v55 = vmov 5   ;;  %vm1058_vm9 = vcmask 195584  }
   0xf   : > { %p136_p3 = scmp.lt.s32.totalorder %s135_s11, 37 }
  0x11   : > { %s2265_s11 = smov (!%p136_p3, %s135_s11), 37 }
  0x12   : > { %s1139_s12 = sshll.u32 %s2265_s11, 3 }
  0x13   : > { %s1228_s15 = scalar_lea.vmem %s2137_s1, %s1139_s12  ;;  %s1878_s20 = scalar_lea.vmem %s2138_s2, %s1139_s12 }
  0x14   : > { %v1231_v1 = vld [vmem:[%s1228_s15 + $0x10] sm:$0xff]  ;;  %v1234_v2 = vld [vmem:[%s1228_s15] sm:$0xff]  ;;  %v1239_v3 = vld [vmem:[%s1228_s15 + $0x18] sm:$0xff] }
  0x15   : > { %179 = vperm.xlu1 %1161, %v1231_v1   ;;  %169 = vperm.xlu0 %1160, %v1234_v2   ;;  %v1242_v4 = vld [vmem:[%s1228_s15 + $0x8] sm:$0xff]  ;;  %v1250_v6 = vld [vmem:[%s1228_s15 + $0x20] sm:$0xff]  ;;  %v1255_v7 = vld [vmem:[%s1228_s15 + $0x38] sm:$0xff] }
  0x16   : > { %v1247_v5 = vld [vmem:[%s1228_s15 + $0x28] sm:$0xff]  ;;  %v1258_v8 = vld [vmem:[%s1228_s15 + $0x30] sm:$0xff]  ;;  %v1266_v10 = vld [vmem:[%s1228_s15 + $0x40] sm:$0xff] }
  0x17   : > { %v1263_v9 = vld [vmem:[%s1228_s15 + $0x48] sm:$0xff]  ;;  %v1271_v11 = vld [vmem:[%s1228_s15 + $0x58] sm:$0xff]  ;;  %v1274_v12 = vld [vmem:[%s1228_s15 + $0x50] sm:$0xff] }
  0x18   : > { %v1279_v13 = vld [vmem:[%s1228_s15 + $0x68] sm:$0xff]  ;;  %v1282_v14 = vld [vmem:[%s1228_s15 + $0x60] sm:$0xff]  ;;  %v1287_v15 = vld [vmem:[%s1228_s15 + $0x78] sm:$0xff] }
  0x19   : > { %184 = vperm.xlu1 %1161, %v1239_v3   ;;  %174 = vperm.xlu0 %1160, %v1242_v4   ;;  %v1290_v16 = vld [vmem:[%s1228_s15 + $0x70] sm:$0xff]  ;;  %v1295_v17 = vld [vmem:[%s1228_s15 + $0x88] sm:$0xff]  ;;  %v1298_v18 = vld [vmem:[%s1228_s15 + $0x80] sm:$0xff] }
  0x1a   : > { %v1303_v19 = vld [vmem:[%s1228_s15 + $0x90] sm:$0xff] }
  0x1d   : > { %194 = vperm.xlu1 %1161, %v1247_v5   ;;  %189 = vperm.xlu0 %1160, %v1250_v6  }
  0x21   : > { %204 = vperm.xlu1 %1161, %v1255_v7   ;;  %199 = vperm.xlu0 %1160, %v1258_v8  }
  0x25   : > { %214 = vperm.xlu1 %1161, %v1263_v9   ;;  %209 = vperm.xlu0 %1160, %v1266_v10  }
  0x29   : > { %224 = vperm.xlu1 %1161, %v1271_v11   ;;  %219 = vperm.xlu0 %1160, %v1274_v12  }
  0x2d   : > { %234 = vperm.xlu1 %1161, %v1279_v13   ;;  %229 = vperm.xlu0 %1160, %v1282_v14  }
  0x31   : > { %244 = vperm.xlu1 %1161, %v1287_v15   ;;  %239 = vperm.xlu0 %1160, %v1290_v16  }
  0x35   : > { %254 = vperm.xlu1 %1161, %v1295_v17   ;;  %249 = vperm.xlu0 %1160, %v1298_v18  }
  0x39   : > { %1162 = vset.pattern.permute.xlu1 %v1187_v20  ;;  %259 = vperm.xlu0 %1160, %v1303_v19  }
  0x3a   : > { %270 = vperm.xlu1 %1162, %v1234_v2  }
  0x3d   : > { %1163 = vset.pattern.permute.xlu0 %v1187_v20 }
  0x3e   : > { %278 = vperm.xlu1 %1162, %v1231_v1   ;;  %274 = vperm.xlu0 %1163, %v1242_v4  }
  0x42   : > { %282 = vperm.xlu1 %1162, %v1239_v3   ;;  %286 = vperm.xlu0 %1163, %v1250_v6  }
  0x46   : > { %290 = vperm.xlu1 %1162, %v1247_v5   ;;  %294 = vperm.xlu0 %1163, %v1258_v8  }
  0x4a   : > { %298 = vperm.xlu1 %1162, %v1255_v7   ;;  %302 = vperm.xlu0 %1163, %v1266_v10  }
  0x4e   : > { %306 = vperm.xlu1 %1162, %v1263_v9   ;;  %310 = vperm.xlu0 %1163, %v1274_v12  }
  0x52   : > { %314 = vperm.xlu1 %1162, %v1271_v11   ;;  %318 = vperm.xlu0 %1163, %v1282_v14  }
  0x56   : > { %322 = vperm.xlu1 %1162, %v1279_v13   ;;  %326 = vperm.xlu0 %1163, %v1290_v16  }
  0x5a   : > { %330 = vperm.xlu1 %1162, %v1287_v15   ;;  %334 = vperm.xlu0 %1163, %v1298_v18  }
  0x5e   : > { %338 = vperm.xlu1 %1162, %v1295_v17   ;;  %342 = vperm.xlu0 %1163, %v1303_v19  }
  0x62   : > { %1164 = vset.pattern.permute.xlu1 %v1188_v21  ;;  %1165 = vset.pattern.permute.xlu0 %v1188_v21 }
  0x63   : > { %372 = vperm.xlu1 %1164, %v1234_v2   ;;  %376 = vperm.xlu0 %1165, %v1242_v4  }
  0x67   : > { %380 = vperm.xlu1 %1164, %v1231_v1   ;;  %388 = vperm.xlu0 %1165, %v1250_v6  }
  0x6b   : > { %384 = vperm.xlu1 %1164, %v1239_v3   ;;  %396 = vperm.xlu0 %1165, %v1258_v8  }
  0x6f   : > { %392 = vperm.xlu1 %1164, %v1247_v5   ;;  %404 = vperm.xlu0 %1165, %v1266_v10  }
  0x73   : > { %400 = vperm.xlu1 %1164, %v1255_v7   ;;  %412 = vperm.xlu0 %1165, %v1274_v12  }
  0x77   : > { %408 = vperm.xlu1 %1164, %v1263_v9   ;;  %420 = vperm.xlu0 %1165, %v1282_v14  }
  0x7b   : > { %416 = vperm.xlu1 %1164, %v1271_v11   ;;  %428 = vperm.xlu0 %1165, %v1290_v16  }
  0x7f   : > { %424 = vperm.xlu1 %1164, %v1279_v13   ;;  %436 = vperm.xlu0 %1165, %v1298_v18  }
  0x83   : > { %432 = vperm.xlu1 %1164, %v1287_v15   ;;  %444 = vperm.xlu0 %1165, %v1303_v19  }
  0x87   : > { %440 = vperm.xlu1 %1164, %v1295_v17   ;;  %1167 = vset.pattern.permute.xlu0 %v1189_v22 }
  0x88   : > { %478 = vperm.xlu0 %1167, %v1242_v4  }
  0x8b   : > { %1166 = vset.pattern.permute.xlu1 %v1189_v22 }
  0x8c   : > { %474 = vperm.xlu1 %1166, %v1234_v2   ;;  %490 = vperm.xlu0 %1167, %v1250_v6  }
  0x90   : > { %482 = vperm.xlu1 %1166, %v1231_v1   ;;  %498 = vperm.xlu0 %1167, %v1258_v8  }
  0x94   : > { %v1349_v23 = vpop.permute.xlu1 %179  ;;  %486 = vperm.xlu1 %1166, %v1239_v3   ;;  %506 = vperm.xlu0 %1167, %v1266_v10   ;;  %v1353_v24 = vpop.permute.xlu0 %169 }
  0x95   : > { %2141 = vst [vmem:[#allocation2_spill] sm:$0xff] %v1349_v23  ;;  %2142 = vst [vmem:[#allocation3_spill] sm:$0xff] %v1353_v24 }
  0x98   : > { %v1355_v25 = vpop.permute.xlu1 %184  ;;  %494 = vperm.xlu1 %1166, %v1247_v5   ;;  %514 = vperm.xlu0 %1167, %v1274_v12   ;;  %v1359_v26 = vpop.permute.xlu0 %174 }
  0x99   : > { %2143 = vst [vmem:[#allocation4_spill] sm:$0xff] %v1355_v25 }
  0x9c   : > { %v1361_v27 = vpop.permute.xlu1 %194  ;;  %502 = vperm.xlu1 %1166, %v1255_v7   ;;  %522 = vperm.xlu0 %1167, %v1282_v14   ;;  %v1365_v28 = vpop.permute.xlu0 %189 }
  0x9d   : > { %2144 = vst [vmem:[#allocation5_spill] sm:$0xff] %v1361_v27  ;;  %2145 = vst [vmem:[#allocation6_spill] sm:$0xff] %v1365_v28 }
  0xa0   : > { %v1367_v29 = vpop.permute.xlu1 %204  ;;  %510 = vperm.xlu1 %1166, %v1263_v9   ;;  %530 = vperm.xlu0 %1167, %v1290_v16   ;;  %v1371_v30 = vpop.permute.xlu0 %199 }
  0xa1   : > { %2146 = vst [vmem:[#allocation7_spill] sm:$0xff] %v1367_v29  ;;  %2147 = vst [vmem:[#allocation8_spill] sm:$0xff] %v1371_v30 }
  0xa4   : > { %v1373_v31 = vpop.permute.xlu1 %214  ;;  %518 = vperm.xlu1 %1166, %v1271_v11   ;;  %538 = vperm.xlu0 %1167, %v1298_v18   ;;  %v1377_v32 = vpop.permute.xlu0 %209 }
  0xa5   : > { %2148 = vst [vmem:[#allocation9_spill] sm:$0xff] %v1373_v31  ;;  %2149 = vst [vmem:[#allocation10_spill] sm:$0xff] %v1377_v32 }
  0xa8   : > { %v1379_v33 = vpop.permute.xlu1 %224  ;;  %526 = vperm.xlu1 %1166, %v1279_v13   ;;  %546 = vperm.xlu0 %1167, %v1303_v19   ;;  %v1383_v34 = vpop.permute.xlu0 %219 }
  0xa9   : > { %2150 = vst [vmem:[#allocation11_spill] sm:$0xff] %v1379_v33  ;;  %2151 = vst [vmem:[#allocation12_spill] sm:$0xff] %v1383_v34  ;;  %v1592_v34 = vld [vmem:[%s2136_s0] sm:$0x7] }
  0xaa   : > { %vm262_vm0 = vcmp.eq.s32.totalorder %v1592_v34, 1  ;;  %vm364_vm2 = vcmp.eq.s32.totalorder %v1592_v34, 2  ;;  %vm466_vm4 = vcmp.eq.s32.totalorder %v1592_v34, 3 }
  0xac   : > { %v1385_v35 = vpop.permute.xlu1 %234  ;;  %534 = vperm.xlu1 %1166, %v1287_v15   ;;  %1169 = vset.pattern.permute.xlu0 %v1190_v36  ;;  %v1388_v37 = vpop.permute.xlu0 %229 }
  0xad   : > { %2152 = vst [vmem:[#allocation13_spill] sm:$0xff] %v1385_v35  ;;  %573 = vperm.xlu0 %1169, %v1242_v4  }
  0xb0   : > { %v1391_v38 = vpop.permute.xlu1 %244  ;;  %542 = vperm.xlu1 %1166, %v1295_v17   ;;  %v1394_v39 = vpop.permute.xlu0 %239 }
  0xb1   : > { %2153 = vst [vmem:[#allocation14_spill] sm:$0xff] %v1391_v38  ;;  %585 = vperm.xlu0 %1169, %v1250_v6  }
  0xb4   : > { %v1397_v40 = vpop.permute.xlu1 %254  ;;  %1168 = vset.pattern.permute.xlu1 %v1190_v36  ;;  %v1399_v41 = vpop.permute.xlu0 %249 }
  0xb5   : > { %2154 = vst [vmem:[#allocation15_spill] sm:$0xff] %v1397_v40  ;;  %569 = vperm.xlu1 %1168, %v1234_v2   ;;  %593 = vperm.xlu0 %1169, %v1258_v8  }
  0xb8   : > { %v1403_v42 = vpop.permute.xlu0 %259 }
  0xb9   : > { %577 = vperm.xlu1 %1168, %v1231_v1   ;;  %v1406_v43 = vpop.permute.xlu1 %270  ;;  %601 = vperm.xlu0 %1169, %v1266_v10  }
  0xba   : > { %2155 = vst [vmem:[#allocation16_spill] sm:$0xff] %v1406_v43 }
  0xbd   : > { %581 = vperm.xlu1 %1168, %v1239_v3   ;;  %v1410_v44 = vpop.permute.xlu1 %278  ;;  %609 = vperm.xlu0 %1169, %v1274_v12   ;;  %v1413_v45 = vpop.permute.xlu0 %274 }
  0xbe   : > { %2156 = vst [vmem:[#allocation17_spill] sm:$0xff] %v1410_v44 }
  0xc1   : > { %589 = vperm.xlu1 %1168, %v1247_v5   ;;  %v1416_v46 = vpop.permute.xlu1 %282  ;;  %617 = vperm.xlu0 %1169, %v1282_v14   ;;  %v1419_v47 = vpop.permute.xlu0 %286 }
  0xc2   : > { %2157 = vst [vmem:[#allocation18_spill] sm:$0xff] %v1416_v46  ;;  %2158 = vst [vmem:[#allocation19_spill] sm:$0xff] %v1419_v47  ;;  %v1193_v46 = vmov 7  }
  0xc5   : > { %597 = vperm.xlu1 %1168, %v1255_v7   ;;  %v1422_v48 = vpop.permute.xlu1 %290  ;;  %625 = vperm.xlu0 %1169, %v1290_v16   ;;  %v1425_v49 = vpop.permute.xlu0 %294 }
  0xc6   : > { %2159 = vst [vmem:[#allocation20_spill] sm:$0xff] %v1422_v48  ;;  %2160 = vst [vmem:[#allocation21_spill] sm:$0xff] %v1425_v49 }
  0xc9   : > { %605 = vperm.xlu1 %1168, %v1263_v9   ;;  %v1428_v50 = vpop.permute.xlu1 %298  ;;  %633 = vperm.xlu0 %1169, %v1298_v18   ;;  %v1431_v51 = vpop.permute.xlu0 %302 }
  0xca   : > { %2161 = vst [vmem:[#allocation22_spill] sm:$0xff] %v1428_v50  ;;  %2162 = vst [vmem:[#allocation23_spill] sm:$0xff] %v1431_v51 }
  0xcd   : > { %613 = vperm.xlu1 %1168, %v1271_v11   ;;  %v1434_v52 = vpop.permute.xlu1 %306  ;;  %641 = vperm.xlu0 %1169, %v1303_v19   ;;  %v1437_v53 = vpop.permute.xlu0 %310 }
  0xce   : > { %2163 = vst [vmem:[#allocation24_spill] sm:$0xff] %v1434_v52  ;;  %2164 = vst [vmem:[#allocation25_spill] sm:$0xff] %v1437_v53  ;;  %v264_v53 = vlaneseq }
  0xd0   : > { %v1595_v51 = vshrl.u32 %v264_v53, 7 }
  0xd1   : > { %621 = vperm.xlu1 %1168, %v1279_v13   ;;  %v1440_v54 = vpop.permute.xlu1 %314  ;;  %1171 = vset.pattern.permute.xlu0 %v1191_v55  ;;  %v1442_v56 = vpop.permute.xlu0 %318 }
  0xd2   : > { %2165 = vst [vmem:[#allocation26_spill] sm:$0xff] %v1440_v54  ;;  %654 = vperm.xlu0 %1171, %v1242_v4   ;;  %v646_v32 = vsub.s32 1, %v1595_v51 }
  0xd5   : > { %629 = vperm.xlu1 %1168, %v1287_v15   ;;  %v1446_v57 = vpop.permute.xlu1 %322  ;;  %v1448_v58 = vpop.permute.xlu0 %326 }
  0xd6   : > { %2166 = vst [vmem:[#allocation27_spill] sm:$0xff] %v1446_v57  ;;  %666 = vperm.xlu0 %1171, %v1250_v6   ;;  %v1192_v57 = vmov 6  }
  0xd9   : > { %637 = vperm.xlu1 %1168, %v1295_v17   ;;  %v1452_v59 = vpop.permute.xlu1 %330  ;;  %v1454_v60 = vpop.permute.xlu0 %334 }
  0xda   : > { %2167 = vst [vmem:[#allocation28_spill] sm:$0xff] %v1452_v59  ;;  %674 = vperm.xlu0 %1171, %v1258_v8  }
  0xdd   : > { %1170 = vset.pattern.permute.xlu1 %v1191_v55  ;;  %v1457_v61 = vpop.permute.xlu1 %338  ;;  %v1459_v62 = vpop.permute.xlu0 %342 }
  0xde   : > { %2168 = vst [vmem:[#allocation29_spill] sm:$0xff] %v1457_v61  ;;  %650 = vperm.xlu1 %1170, %v1234_v2   ;;  %682 = vperm.xlu0 %1171, %v1266_v10  }
  0xe2   : > { %658 = vperm.xlu1 %1170, %v1231_v1   ;;  %v1464_v63 = vpop.permute.xlu1 %372  ;;  %690 = vperm.xlu0 %1171, %v1274_v12   ;;  %v1467_v20 = vpop.permute.xlu0 %376 }
  0xe3   : > { %2169 = vst [vmem:[#allocation30_spill] sm:$0xff] %v1464_v63  ;;  %2170 = vst [vmem:[#allocation31_spill] sm:$0xff] %v1467_v20 }
  0xe6   : > { %662 = vperm.xlu1 %1170, %v1239_v3   ;;  %v1470_v21 = vpop.permute.xlu1 %380  ;;  %698 = vperm.xlu0 %1171, %v1282_v14   ;;  %v1473_v22 = vpop.permute.xlu0 %388 }
  0xe7   : > { %2171 = vst [vmem:[#allocation32_spill] sm:$0xff] %v1470_v21  ;;  %2172 = vst [vmem:[#allocation33_spill] sm:$0xff] %v1473_v22 }
  0xea   : > { %670 = vperm.xlu1 %1170, %v1247_v5   ;;  %v1476_v36 = vpop.permute.xlu1 %384  ;;  %706 = vperm.xlu0 %1171, %v1290_v16   ;;  %v1479_v55 = vpop.permute.xlu0 %396 }
  0xeb   : > { %2173 = vst [vmem:[#allocation34_spill] sm:$0xff] %v1476_v36  ;;  %2174 = vst [vmem:[#allocation35_spill] sm:$0xff] %v1479_v55  ;;  %v2199_v55 = vmov 0  }
  0xec   : > { %v1603_v49 = vsel %vm262_vm0, 1, %v2199_v55 }
  0xed   : > { %v1606_v30 = vrot.slane %v1603_v49, %v646_v32 }
  0xee   : > { %678 = vperm.xlu1 %1170, %v1255_v7   ;;  %v1482_v0 = vpop.permute.xlu1 %392  ;;  %714 = vperm.xlu0 %1171, %v1298_v18   ;;  %v1485_v61 = vpop.permute.xlu0 %404 }
  0xef   : > { %2175 = vst [vmem:[#allocation36_spill] sm:$0xff] %v1482_v0  ;;  %2176 = vst [vmem:[#allocation37_spill] sm:$0xff] %v1485_v61  ;;  %vm648_vm1 = vcmp.eq.s32.totalorder %v1606_v30, 1 }
  0xf2   : > { %686 = vperm.xlu1 %1170, %v1263_v9   ;;  %v1488_v40 = vpop.permute.xlu1 %400  ;;  %722 = vperm.xlu0 %1171, %v1303_v19   ;;  %v1491_v59 = vpop.permute.xlu0 %412 }
  0xf3   : > { %2177 = vst [vmem:[#allocation38_spill] sm:$0xff] %v1488_v40  ;;  %2178 = vst [vmem:[#allocation39_spill] sm:$0xff] %v1491_v59 }
  0xf6   : > { %694 = vperm.xlu1 %1170, %v1271_v11   ;;  %v1494_v38 = vpop.permute.xlu1 %408  ;;  %1173 = vset.pattern.permute.xlu0 %v1192_v57  ;;  %v1496_v35 = vpop.permute.xlu0 %420 }
  0xf7   : > { %2179 = vst [vmem:[#allocation40_spill] sm:$0xff] %v1494_v38  ;;  %754 = vperm.xlu0 %1173, %v1242_v4  }
  0xfa   : > { %702 = vperm.xlu1 %1170, %v1279_v13   ;;  %v1500_v54 = vpop.permute.xlu1 %416  ;;  %v1502_v33 = vpop.permute.xlu0 %428 }
  0xfb   : > { %2180 = vst [vmem:[#allocation41_spill] sm:$0xff] %v1500_v54  ;;  %766 = vperm.xlu0 %1173, %v1250_v6  }
  0xfe   : > { %710 = vperm.xlu1 %1170, %v1287_v15   ;;  %v1506_v52 = vpop.permute.xlu1 %424  ;;  %v1508_v31 = vpop.permute.xlu0 %436 }
  0xff   : > { %2181 = vst [vmem:[#allocation42_spill] sm:$0xff] %v1506_v52  ;;  %774 = vperm.xlu0 %1173, %v1258_v8  }
 0x102   : > { %718 = vperm.xlu1 %1170, %v1295_v17   ;;  %v1512_v38 = vpop.permute.xlu1 %432  ;;  %v1514_v40 = vpop.permute.xlu0 %444 }
 0x103   : > { %2182 = vst [vmem:[#allocation43_spill] sm:$0xff] %v1512_v38  ;;  %782 = vperm.xlu0 %1173, %v1266_v10  }
 0x106   : > { %1172 = vset.pattern.permute.xlu1 %v1192_v57  ;;  %v1517_v54 = vpop.permute.xlu1 %440 }
 0x107   : > { %2183 = vst [vmem:[#allocation44_spill] sm:$0xff] %v1517_v54  ;;  %750 = vperm.xlu1 %1172, %v1234_v2   ;;  %790 = vperm.xlu0 %1173, %v1274_v12   ;;  %v1521_v52 = vpop.permute.xlu0 %478 }
 0x108   : > { %2184 = vst [vmem:[#allocation45_spill] sm:$0xff] %v1521_v52 }
 0x10b   : > { %758 = vperm.xlu1 %1172, %v1231_v1   ;;  %v1524_v50 = vpop.permute.xlu1 %474  ;;  %798 = vperm.xlu0 %1173, %v1282_v14   ;;  %v1527_v38 = vpop.permute.xlu0 %490 }
 0x10c   : > { %2185 = vst [vmem:[#allocation46_spill] sm:$0xff] %v1524_v50  ;;  %2186 = vst [vmem:[#allocation47_spill] sm:$0xff] %v1527_v38 }
 0x10f   : > { %762 = vperm.xlu1 %1172, %v1239_v3   ;;  %v1530_v29 = vpop.permute.xlu1 %482  ;;  %806 = vperm.xlu0 %1173, %v1290_v16   ;;  %v1533_v57 = vpop.permute.xlu0 %498 }
 0x110   : > { %2187 = vst [vmem:[#allocation48_spill] sm:$0xff] %v1530_v29  ;;  %2188 = vst [vmem:[#allocation49_spill] sm:$0xff] %v1533_v57 }
 0x113   : > { %770 = vperm.xlu1 %1172, %v1247_v5   ;;  %v1536_v54 = vpop.permute.xlu1 %486  ;;  %814 = vperm.xlu0 %1173, %v1298_v18   ;;  %v1539_v0 = vpop.permute.xlu0 %506 }
 0x114   : > { %2189 = vst [vmem:[#allocation50_spill] sm:$0xff] %v1536_v54  ;;  %2190 = vst [vmem:[#allocation51_spill] sm:$0xff] %v1539_v0 }
 0x117   : > { %778 = vperm.xlu1 %1172, %v1255_v7   ;;  %v1542_v48 = vpop.permute.xlu1 %494  ;;  %822 = vperm.xlu0 %1173, %v1303_v19   ;;  %v1545_v27 = vpop.permute.xlu0 %514 }
 0x118   : > { %2191 = vst [vmem:[#allocation52_spill] sm:$0xff] %v1542_v48  ;;  %2192 = vst [vmem:[#allocation53_spill] sm:$0xff] %v1545_v27  ;;  %v1194_v27 = vmov 8  }
 0x11b   : > { %786 = vperm.xlu1 %1172, %v1263_v9   ;;  %v1548_v36 = vpop.permute.xlu1 %502  ;;  %1175 = vset.pattern.permute.xlu0 %v1193_v46  ;;  %v1550_v25 = vpop.permute.xlu0 %522 }
 0x11c   : > { %2193 = vst [vmem:[#allocation54_spill] sm:$0xff] %v1548_v36  ;;  %868 = vperm.xlu0 %1175, %v1242_v4  }
 0x11f   : > { %794 = vperm.xlu1 %1172, %v1271_v11   ;;  %v1554_v54 = vpop.permute.xlu1 %510  ;;  %v1556_v29 = vpop.permute.xlu0 %530 }
 0x120   : > { %2194 = vst [vmem:[#allocation55_spill] sm:$0xff] %v1554_v54  ;;  %880 = vperm.xlu0 %1175, %v1250_v6  }
 0x123   : > { %802 = vperm.xlu1 %1172, %v1279_v13   ;;  %v1560_v48 = vpop.permute.xlu1 %518  ;;  %v1562_v21 = vpop.permute.xlu0 %538 }
 0x124   : > { %2195 = vst [vmem:[#allocation56_spill] sm:$0xff] %v1560_v48  ;;  %888 = vperm.xlu0 %1175, %v1258_v8  }
 0x127   : > { %810 = vperm.xlu1 %1172, %v1287_v15   ;;  %v1566_v36 = vpop.permute.xlu1 %526  ;;  %v1568_v44 = vpop.permute.xlu0 %546 }
 0x128   : > { %2196 = vst [vmem:[#allocation57_spill] sm:$0xff] %v1566_v36  ;;  %896 = vperm.xlu0 %1175, %v1266_v10  }
 0x12b   : > { %818 = vperm.xlu1 %1172, %v1295_v17   ;;  %v1572_v54 = vpop.permute.xlu1 %534 }
 0x12c   : > { %2197 = vst [vmem:[#allocation58_spill] sm:$0xff] %v1572_v54  ;;  %904 = vperm.xlu0 %1175, %v1274_v12   ;;  %v574_v23 = vpop.permute.xlu0 %573 }
 0x12f   : > { %1174 = vset.pattern.permute.xlu1 %v1193_v46  ;;  %v1575_v48 = vpop.permute.xlu1 %542 }
 0x130   : > { %2198 = vst [vmem:[#allocation59_spill] sm:$0xff] %v1575_v48  ;;  %864 = vperm.xlu1 %1174, %v1234_v2   ;;  %912 = vperm.xlu0 %1175, %v1282_v14   ;;  %v586_v50 = vpop.permute.xlu0 %585 }
 0x134   : > { %872 = vperm.xlu1 %1174, %v1231_v1   ;;  %v1580_v36 = vpop.permute.xlu1 %569  ;;  %920 = vperm.xlu0 %1175, %v1290_v16   ;;  %v594_v63 = vpop.permute.xlu0 %593 }
 0x138   : > { %876 = vperm.xlu1 %1174, %v1239_v3   ;;  %v578_v54 = vpop.permute.xlu1 %577  ;;  %928 = vperm.xlu0 %1175, %v1298_v18   ;;  %v602_v46 = vpop.permute.xlu0 %601 }
 0x13c   : > { %884 = vperm.xlu1 %1174, %v1247_v5   ;;  %v582_v48 = vpop.permute.xlu1 %581  ;;  %936 = vperm.xlu0 %1175, %v1303_v19   ;;  %v610_v43 = vpop.permute.xlu0 %609 }
 0x140   : > { %892 = vperm.xlu1 %1174, %v1255_v7   ;;  %v590_v24 = vpop.permute.xlu1 %589  ;;  %1177 = vset.pattern.permute.xlu0 %v1194_v27  ;;  %v618_v59 = vpop.permute.xlu0 %617 }
 0x141   : > { %949 = vperm.xlu0 %1177, %v1242_v4  }
 0x144   : > { %900 = vperm.xlu1 %1174, %v1263_v9   ;;  %v598_v0 = vpop.permute.xlu1 %597  ;;  %v626_v61 = vpop.permute.xlu0 %625 }
 0x145   : > { %961 = vperm.xlu0 %1177, %v1250_v6  }
 0x148   : > { %908 = vperm.xlu1 %1174, %v1271_v11   ;;  %v606_v4 = vpop.permute.xlu1 %605  ;;  %v634_v57 = vpop.permute.xlu0 %633 }
 0x149   : > { %969 = vperm.xlu0 %1177, %v1258_v8  }
 0x14c   : > { %916 = vperm.xlu1 %1174, %v1279_v13   ;;  %v614_v53 = vpop.permute.xlu1 %613  ;;  %v642_v6 = vpop.permute.xlu0 %641 }
 0x14d   : > { %977 = vperm.xlu0 %1177, %v1266_v10  }
 0x150   : > { %924 = vperm.xlu1 %1174, %v1287_v15   ;;  %v622_v38 = vpop.permute.xlu1 %621 }
 0x151   : > { %985 = vperm.xlu0 %1177, %v1274_v12   ;;  %v655_v8 = vpop.permute.xlu0 %654 }
 0x152   : > { %v726_v22 = vsel %vm648_vm1, %v655_v8, %v574_v23 }
 0x154   : > { %932 = vperm.xlu1 %1174, %v1295_v17   ;;  %v630_v47 = vpop.permute.xlu1 %629 }
 0x155   : > { %993 = vperm.xlu0 %1177, %v1282_v14   ;;  %v667_v28 = vpop.permute.xlu0 %666 }
 0x156   : > { %v729_v10 = vsel %vm648_vm1, %v667_v28, %v586_v50 }
 0x158   : > { %1176 = vset.pattern.permute.xlu1 %v1194_v27  ;;  %v638_v52 = vpop.permute.xlu1 %637 }
 0x159   : > { %945 = vperm.xlu1 %1176, %v1234_v2   ;;  %1001 = vperm.xlu0 %1177, %v1290_v16   ;;  %v675_v12 = vpop.permute.xlu0 %674 }
 0x15a   : > { %v731_v20 = vsel %vm648_vm1, %v675_v12, %v594_v63 }
 0x15d   : > { %953 = vperm.xlu1 %1176, %v1231_v1   ;;  %v651_v23 = vpop.permute.xlu1 %650  ;;  %1009 = vperm.xlu0 %1177, %v1298_v18   ;;  %v683_v14 = vpop.permute.xlu0 %682 }
 0x15e   : > { %v733_v8 = vsel %vm648_vm1, %v683_v14, %v602_v46 }
 0x161   : > { %957 = vperm.xlu1 %1176, %v1239_v3   ;;  %v659_v27 = vpop.permute.xlu1 %658  ;;  %1017 = vperm.xlu0 %1177, %v1303_v19   ;;  %v691_v2 = vpop.permute.xlu0 %690 }
 0x162   : > { %v1631_v16 = vsel %vm648_vm1, %v659_v27, %v578_v54  ;;  %v735_v1 = vsel %vm648_vm1, %v691_v2, %v610_v43 }
 0x165   : > { %965 = vperm.xlu1 %1176, %v1247_v5   ;;  %v663_v18 = vpop.permute.xlu1 %662  ;;  %v699_v28 = vpop.permute.xlu0 %698 }
 0x166   : > { %v1638_v50 = vsel %vm648_vm1, %v663_v18, %v582_v48  ;;  %v737_v3 = vsel %vm648_vm1, %v699_v28, %v618_v59 }
 0x169   : > { %973 = vperm.xlu1 %1176, %v1255_v7   ;;  %v671_v19 = vpop.permute.xlu1 %670  ;;  %v707_v63 = vpop.permute.xlu0 %706 }
 0x16a   : > { %v1645_v54 = vsel %vm648_vm1, %v671_v19, %v590_v24  ;;  %v1649_v5 = vsel %vm648_vm1, %v707_v63, %v626_v61  ;;  %v365_v24 = vsel %vm364_vm2, 1, %v2199_v55 }
 0x16b   : > { %v1662_v46 = vrot.slane %v365_v24, %v646_v32 }
 0x16d   : > { %981 = vperm.xlu1 %1176, %v1263_v9   ;;  %v679_v43 = vpop.permute.xlu1 %678  ;;  %v715_v48 = vpop.permute.xlu0 %714  ;;  %vm748_vm3 = vcmp.eq.s32.totalorder %v1662_v46, 1 }
 0x16e   : > { %v1655_v59 = vsel %vm648_vm1, %v679_v43, %v598_v0  ;;  %v1659_v7 = vsel %vm648_vm1, %v715_v48, %v634_v57  ;;  %v725_v43 = vsel %vm648_vm1, %v651_v23, %v1580_v36 }
 0x171   : > { %989 = vperm.xlu1 %1176, %v1271_v11   ;;  %v687_v61 = vpop.permute.xlu1 %686  ;;  %v723_v12 = vpop.permute.xlu0 %722 }
 0x172   : > { %v1667_v9 = vsel %vm648_vm1, %v687_v61, %v606_v4  ;;  %v1671_v0 = vsel %vm648_vm1, %v723_v12, %v642_v6 }
 0x175   : > { %997 = vperm.xlu1 %1176, %v1279_v13   ;;  %v695_v57 = vpop.permute.xlu1 %694 }
 0x176   : > { %v1677_v32 = vsel %vm648_vm1, %v695_v57, %v614_v53  ;;  %v755_v11 = vpop.permute.xlu0 %754 }
 0x177   : > { %v1681_v14 = vsel %vm748_vm3, %v755_v11, %v726_v22 }
 0x179   : > { %1005 = vperm.xlu1 %1176, %v1287_v15   ;;  %v703_v4 = vpop.permute.xlu1 %702 }
 0x17a   : > { %v1686_v6 = vsel %vm648_vm1, %v703_v4, %v622_v38  ;;  %v767_v27 = vpop.permute.xlu0 %766  ;;  %v266_v38 = vsub.s32 0, %v1595_v51 }
 0x17b   : > { %v1690_v13 = vsel %vm748_vm3, %v767_v27, %v729_v10 }
 0x17c   : > { %v267_v19 = vrot.slane %v1603_v49, %v266_v38  ;;  %v369_v63 = vrot.slane %v365_v24, %v266_v38 }
 0x17d   : > { %1013 = vperm.xlu1 %1176, %v1295_v17   ;;  %v711_v53 = vpop.permute.xlu1 %710  ;;  %v467_v17 = vsel %vm466_vm4, 1, %v2199_v55 }
 0x17e   : > { %v1695_v2 = vsel %vm648_vm1, %v711_v53, %v630_v47  ;;  %v775_v22 = vpop.permute.xlu0 %774  ;;  %vm1722_vm5 = vcmp.eq.s32.totalorder %v267_v19, 1  ;;  %vm1730_vm6 = vcmp.eq.s32.totalorder %v369_v63, 1 }
 0x17f   : > { %v1699_v15 = vsel %vm748_vm3, %v775_v22, %v731_v20  ;;  %v471_v20 = vrot.slane %v467_v17, %v266_v38  ;;  %v357_v30 = vsel %vm1722_vm5, %v1442_v56, %v1388_v37 }
 0x180   : > { %v459_v23 = vsel %vm1730_vm6, %v1496_v35, %v357_v30  ;;  %v359_v35 = vsel %vm1722_vm5, %v1448_v58, %v1394_v39 }
 0x181   : > { %v719_v18 = vpop.permute.xlu1 %718  ;;  %vm1737_vm7 = vcmp.eq.s32.totalorder %v471_v20, 1  ;;  %v461_v11 = vsel %vm1730_vm6, %v1502_v33, %v359_v35  ;;  %v361_v33 = vsel %vm1722_vm5, %v1454_v60, %v1399_v41  ;;  %v346_v35 = vsel %vm1722_vm5, %v1413_v45, %v1359_v26 }
 0x182   : > { %v742_v10 = vsel %vm648_vm1, %v719_v18, %v638_v52  ;;  %v783_v28 = vpop.permute.xlu0 %782  ;;  %v561_v12 = vsel %vm1737_vm7, %v1550_v25, %v459_v23 }
 0x183   : > { %v1708_v47 = vsel %vm748_vm3, %v783_v28, %v733_v8 }
 0x186   : > { %v751_v34 = vpop.permute.xlu1 %750  ;;  %v791_v48 = vpop.permute.xlu0 %790 }
 0x187   : > { %v1716_v52 = vsel %vm748_vm3, %v751_v34, %v725_v43  ;;  %v1720_v55 = vsel %vm748_vm3, %v791_v48, %v735_v1 }
 0x18a   : > { %v759_v24 = vpop.permute.xlu1 %758  ;;  %v799_v61 = vpop.permute.xlu0 %798 }
 0x18b   : > { %v1747_v37 = vsel %vm748_vm3, %v759_v24, %v1631_v16  ;;  %v837_v56 = vsel %vm748_vm3, %v799_v61, %v737_v3  ;;  %v563_v16 = vsel %vm1737_vm7, %v1556_v29, %v461_v11  ;;  %v463_v29 = vsel %vm1730_vm6, %v1508_v31, %v361_v33  ;;  %v2206_v11 = vld [vmem:[#allocation31_spill] sm:$0xff]  ;;  %v2208_v33 = vld [vmem:[#allocation6_spill] sm:$0xff] }
 0x18c   : > { %v1751_v57 = vmul.f32 %v837_v56, %v561_v12  ;;  %v363_v31 = vsel %vm1722_vm5, %v1459_v62, %v1403_v42  ;;  %v941_v61 = vsub.s32 2, %v1595_v51  ;;  %v448_v51 = vsel %vm1730_vm6, %v2206_v11, %v346_v35  ;;  %v2216_v11 = vld [vmem:[#allocation10_spill] sm:$0xff] }
 0x18d   : > { %v465_v60 = vsel %vm1730_vm6, %v1514_v40, %v363_v31 }
 0x18e   : > { %v763_v25 = vpop.permute.xlu1 %762  ;;  %v807_v4 = vpop.permute.xlu0 %806  ;;  %v1849_v56 = vrot.slane %v1603_v49, %v941_v61 }
 0x18f   : > { %v1766_v3 = vsel %vm748_vm3, %v763_v25, %v1638_v50  ;;  %v839_v27 = vsel %vm748_vm3, %v807_v4, %v1649_v5  ;;  %v565_v50 = vsel %vm1737_vm7, %v1562_v21, %v463_v29  ;;  %v2207_v25 = vld [vmem:[#allocation45_spill] sm:$0xff]  ;;  %v2209_v29 = vld [vmem:[#allocation19_spill] sm:$0xff] }
 0x190   : > { %v1771_v39 = vmul.f32 %v839_v27, %v563_v16  ;;  %vm943_vm8 = vcmp.eq.s32.totalorder %v1849_v56, 1  ;;  %v550_v49 = vsel %vm1737_vm7, %v2207_v25, %v448_v51  ;;  %v349_v26 = vsel %vm1722_vm5, %v2209_v29, %v2208_v33  ;;  %v2217_v51 = vld [vmem:[#allocation23_spill] sm:$0xff] }
 0x191   : > { %v845_v16 = vmul.f32 %v1681_v14, %v550_v49  ;;  %v2218_v49 = vld [vmem:[#allocation37_spill] sm:$0xff]  ;;  %v2219_v33 = vld [vmem:[#allocation51_spill] sm:$0xff] }
 0x192   : > { %v771_v58 = vpop.permute.xlu1 %770  ;;  %v815_v53 = vpop.permute.xlu0 %814 }
 0x193   : > { %v1786_v5 = vsel %vm748_vm3, %v771_v58, %v1645_v54  ;;  %v841_v22 = vsel %vm748_vm3, %v815_v53, %v1659_v7  ;;  %v567_v54 = vsel %vm1737_vm7, %v1568_v44, %v465_v60  ;;  %v2210_v58 = vld [vmem:[#allocation33_spill] sm:$0xff] }
 0x194   : > { %v1791_v41 = vmul.f32 %v841_v22, %v565_v50  ;;  %v451_v14 = vsel %vm1730_vm6, %v2210_v58, %v349_v26  ;;  %v2211_v50 = vld [vmem:[#allocation47_spill] sm:$0xff]  ;;  %v2220_v58 = vld [vmem:[#allocation12_spill] sm:$0xff] }
 0x195   : > { %v553_v22 = vsel %vm1737_vm7, %v2211_v50, %v451_v14  ;;  %v2221_v14 = vld [vmem:[#allocation25_spill] sm:$0xff]  ;;  %v2222_v50 = vld [vmem:[#allocation39_spill] sm:$0xff] }
 0x196   : > { %v779_v21 = vpop.permute.xlu1 %778  ;;  %v823_v38 = vpop.permute.xlu0 %822  ;;  %v848_v60 = vmul.f32 %v1690_v13, %v553_v22 }
 0x197   : > { %v1806_v7 = vsel %vm748_vm3, %v779_v21, %v1655_v59  ;;  %v843_v18 = vsel %vm748_vm3, %v823_v38, %v1671_v0  ;;  %v2212_v38 = vld [vmem:[#allocation8_spill] sm:$0xff] }
 0x198   : > { %v1811_v42 = vmul.f32 %v843_v18, %v567_v54  ;;  %v2213_v54 = vld [vmem:[#allocation21_spill] sm:$0xff] }
 0x199   : > { %v351_v18 = vsel %vm1722_vm5, %v2213_v54, %v2212_v38 }
 0x19a   : > { %v787_v62 = vpop.permute.xlu1 %786 }
 0x19b   : > { %v1816_v40 = vsel %vm748_vm3, %v787_v62, %v1667_v9  ;;  %v869_v28 = vpop.permute.xlu0 %868 }
 0x19e   : > { %v795_v17 = vpop.permute.xlu1 %794 }
 0x19f   : > { %v1821_v44 = vsel %vm748_vm3, %v795_v17, %v1677_v32  ;;  %v881_v59 = vpop.permute.xlu0 %880 }
 0x1a2   : > { %v803_v19 = vpop.permute.xlu1 %802 }
 0x1a3   : > { %v1826_v0 = vsel %vm748_vm3, %v803_v19, %v1686_v6  ;;  %v889_v63 = vpop.permute.xlu0 %888 }
 0x1a6   : > { %v811_v20 = vpop.permute.xlu1 %810 }
 0x1a7   : > { %v1831_v9 = vsel %vm748_vm3, %v811_v20, %v1695_v2  ;;  %v897_v43 = vpop.permute.xlu0 %896  ;;  %v2215_v20 = vld [vmem:[#allocation49_spill] sm:$0xff] }
 0x1aa   : > { %v819_v34 = vpop.permute.xlu1 %818 }
 0x1ab   : > { %v1835_v32 = vsel %vm748_vm3, %v819_v34, %v742_v10  ;;  %v905_v48 = vpop.permute.xlu0 %904 }
 0x1af   : > { %v1837_v30 = vpop.permute.xlu1 %864  ;;  %v913_v23 = vpop.permute.xlu0 %912 }
 0x1b3   : > { %v1839_v24 = vpop.permute.xlu1 %872  ;;  %v1841_v6 = vpop.permute.xlu0 %920 }
 0x1b7   : > { %v1844_v12 = vpop.permute.xlu1 %876  ;;  %v1846_v2 = vpop.permute.xlu0 %928 }
 0x1bb   : > { %v1851_v46 = vpop.permute.xlu1 %884  ;;  %v1853_v10 = vpop.permute.xlu0 %936 }
 0x1bf   : > { %v1866_v4 = vpop.permute.xlu1 %892 }
 0x1c0   : > { %v950_v27 = vpop.permute.xlu0 %949 }
 0x1c1   : > { %v1021_v45 = vsel %vm943_vm8, %v950_v27, %v869_v28  ;;  %v2214_v28 = vld [vmem:[#allocation35_spill] sm:$0xff] }
 0x1c2   : > { %v1040_v53 = vmul.f32 %v1021_v45, %v845_v16  ;;  %v453_v17 = vsel %vm1730_vm6, %v2214_v28, %v351_v18 }
 0x1c3   : > { %v1888_v31 = vpop.permute.xlu1 %900  ;;  %v555_v13 = vsel %vm1737_vm7, %v2215_v20, %v453_v17  ;;  %v2225_v20 = vld [vmem:[#allocation16_spill] sm:$0xff] }
 0x1c4   : > { %1060 = vst.msk [vmem:[%s1878_s20 + $0x8] sm:$0xff] %vm1058_vm9, %v1040_v53  ;;  %v962_v21 = vpop.permute.xlu0 %961  ;;  %v850_v61 = vmul.f32 %v1699_v15, %v555_v13 }
 0x1c5   : > { %v1024_v62 = vsel %vm943_vm8, %v962_v21, %v881_v59  ;;  %v353_v59 = vsel %vm1722_vm5, %v2217_v51, %v2216_v11  ;;  %v2223_v21 = vld [vmem:[#allocation53_spill] sm:$0xff]  ;;  %v2227_v11 = vld [vmem:[#allocation46_spill] sm:$0xff] }
 0x1c6   : > { %v1043_v19 = vmul.f32 %v1024_v62, %v848_v60  ;;  %v455_v16 = vsel %vm1730_vm6, %v2218_v49, %v353_v59 }
 0x1c7   : > { %v1905_v34 = vpop.permute.xlu1 %908  ;;  %v557_v15 = vsel %vm1737_vm7, %v2219_v33, %v455_v16  ;;  %v2228_v16 = vld [vmem:[#allocation2_spill] sm:$0xff] }
 0x1c8   : > { %1063 = vst.msk [vmem:[%s1878_s20 + $0x20] sm:$0xff] %vm1058_vm9, %v1043_v19  ;;  %v970_v35 = vpop.permute.xlu0 %969  ;;  %v852_v26 = vmul.f32 %v1708_v47, %v557_v15  ;;  %v2224_v19 = vld [vmem:[#allocation3_spill] sm:$0xff]  ;;  %v2230_v15 = vld [vmem:[#allocation32_spill] sm:$0xff] }
 0x1c9   : > { %v1026_v25 = vsel %vm943_vm8, %v970_v35, %v889_v63  ;;  %v355_v63 = vsel %vm1722_vm5, %v2221_v14, %v2220_v58  ;;  %v345_v13 = vsel %vm1722_vm5, %v2225_v20, %v2224_v19  ;;  %v2231_v58 = vld [vmem:[#allocation48_spill] sm:$0xff] }
 0x1ca   : > { %v1045_v27 = vmul.f32 %v1026_v25, %v850_v61  ;;  %v457_v22 = vsel %vm1730_vm6, %v2222_v50, %v355_v63  ;;  %v2226_v61 = vld [vmem:[#allocation30_spill] sm:$0xff]  ;;  %v2237_v19 = vld [vmem:[#allocation20_spill] sm:$0xff] }
 0x1cb   : > { %v1922_v29 = vpop.permute.xlu1 %916  ;;  %v559_v47 = vsel %vm1737_vm7, %v2223_v21, %v457_v22  ;;  %v447_v35 = vsel %vm1730_vm6, %v2226_v61, %v345_v13  ;;  %v2233_v50 = vld [vmem:[#allocation18_spill] sm:$0xff]  ;;  %v2238_v13 = vld [vmem:[#allocation36_spill] sm:$0xff] }
 0x1cc   : > { %1065 = vst.msk [vmem:[%s1878_s20 + $0x30] sm:$0xff] %vm1058_vm9, %v1045_v27  ;;  %v978_v45 = vpop.permute.xlu0 %977  ;;  %v854_v54 = vmul.f32 %v1720_v55, %v559_v47  ;;  %v549_v51 = vsel %vm1737_vm7, %v2227_v11, %v447_v35 }
 0x1cd   : > { %v1028_v53 = vsel %vm943_vm8, %v978_v45, %v897_v43  ;;  %v844_v59 = vmul.f32 %v1716_v52, %v549_v51 }
 0x1ce   : > { %v1047_v60 = vmul.f32 %v1028_v53, %v852_v26  ;;  %v2232_v53 = vld [vmem:[#allocation4_spill] sm:$0xff] }
 0x1cf   : > { %v1939_v38 = vpop.permute.xlu1 %924  ;;  %v348_v22 = vsel %vm1722_vm5, %v2233_v50, %v2232_v53  ;;  %v2248_v53 = vld [vmem:[#allocation11_spill] sm:$0xff]  ;;  %v2249_v50 = vld [vmem:[#allocation26_spill] sm:$0xff] }
 0x1d0   : > { %1067 = vst.msk [vmem:[%s1878_s20 + $0x40] sm:$0xff] %vm1058_vm9, %v1047_v60  ;;  %v986_v18 = vpop.permute.xlu0 %985 }
 0x1d1   : > { %v1030_v43 = vsel %vm943_vm8, %v986_v18, %v905_v48  ;;  %v2235_v18 = vld [vmem:[#allocation50_spill] sm:$0xff] }
 0x1d2   : > { %v1049_v62 = vmul.f32 %v1030_v43, %v854_v54 }
 0x1d3   : > { %v1946_v28 = vpop.permute.xlu1 %932 }
 0x1d4   : > { %1069 = vst.msk [vmem:[%s1878_s20 + $0x50] sm:$0xff] %vm1058_vm9, %v1049_v62  ;;  %v994_v17 = vpop.permute.xlu0 %993 }
 0x1d5   : > { %v1032_v55 = vsel %vm943_vm8, %v994_v17, %v913_v23  ;;  %v2229_v23 = vld [vmem:[#allocation17_spill] sm:$0xff] }
 0x1d6   : > { %v1051_v48 = vmul.f32 %v1032_v55, %v1751_v57  ;;  %v347_v27 = vsel %vm1722_vm5, %v2229_v23, %v2228_v16  ;;  %v2236_v17 = vld [vmem:[#allocation5_spill] sm:$0xff]  ;;  %v2243_v23 = vld [vmem:[#allocation54_spill] sm:$0xff] }
 0x1d7   : > { %v449_v52 = vsel %vm1730_vm6, %v2230_v15, %v347_v27  ;;  %v350_v20 = vsel %vm1722_vm5, %v2237_v19, %v2236_v17  ;;  %v2244_v15 = vld [vmem:[#allocation9_spill] sm:$0xff] }
 0x1d8   : > { %1071 = vst.msk [vmem:[%s1878_s20 + $0x60] sm:$0xff] %vm1058_vm9, %v1051_v48  ;;  %v946_v25 = vpop.permute.xlu1 %945  ;;  %v1002_v49 = vpop.permute.xlu0 %1001  ;;  %v551_v14 = vsel %vm1737_vm7, %v2231_v58, %v449_v52  ;;  %v452_v55 = vsel %vm1730_vm6, %v2238_v13, %v350_v20  ;;  %v2239_v48 = vld [vmem:[#allocation52_spill] sm:$0xff]  ;;  %v2255_v19 = vld [vmem:[#allocation57_spill] sm:$0xff] }
 0x1d9   : > { %v1020_v33 = vsel %vm943_vm8, %v946_v25, %v1837_v30  ;;  %v1034_v57 = vsel %vm943_vm8, %v1002_v49, %v1841_v6  ;;  %v846_v63 = vmul.f32 %v1747_v37, %v551_v14  ;;  %v2234_v37 = vld [vmem:[#allocation34_spill] sm:$0xff]  ;;  %v554_v11 = vsel %vm1737_vm7, %v2239_v48, %v452_v55  ;;  %v2245_v52 = vld [vmem:[#allocation24_spill] sm:$0xff] }
 0x1da   : > { %v1039_v26 = vmul.f32 %v1020_v33, %v844_v59  ;;  %v1053_v45 = vmul.f32 %v1034_v57, %v1771_v39  ;;  %v450_v21 = vsel %vm1730_vm6, %v2234_v37, %v348_v22  ;;  %v849_v51 = vmul.f32 %v1786_v5, %v554_v11  ;;  %v2241_v59 = vld [vmem:[#allocation22_spill] sm:$0xff]  ;;  %v2257_v13 = vld [vmem:[#allocation28_spill] sm:$0xff] }
 0x1db   : > { %v552_v43 = vsel %vm1737_vm7, %v2235_v18, %v450_v21  ;;  %v2242_v49 = vld [vmem:[#allocation38_spill] sm:$0xff]  ;;  %v2251_v21 = vld [vmem:[#allocation56_spill] sm:$0xff]  ;;  %v2252_v18 = vld [vmem:[#allocation13_spill] sm:$0xff] }
 0x1dc   : > { %1059 = vst.msk [vmem:[%s1878_s20] sm:$0xff] %vm1058_vm9, %v1039_v26  ;;  %1073 = vst.msk [vmem:[%s1878_s20 + $0x70] sm:$0xff] %vm1058_vm9, %v1053_v45  ;;  %v954_v30 = vpop.permute.xlu1 %953  ;;  %v1010_v6 = vpop.permute.xlu0 %1009  ;;  %v847_v62 = vmul.f32 %v1766_v3, %v552_v43  ;;  %v2246_v45 = vld [vmem:[#allocation40_spill] sm:$0xff]  ;;  %v2253_v43 = vld [vmem:[#allocation27_spill] sm:$0xff] }
 0x1dd   : > { %v1022_v39 = vsel %vm943_vm8, %v954_v30, %v1839_v24  ;;  %v1036_v60 = vsel %vm943_vm8, %v1010_v6, %v1846_v2 }
 0x1de   : > { %v1041_v47 = vmul.f32 %v1022_v39, %v846_v63  ;;  %v1055_v54 = vmul.f32 %v1036_v60, %v1791_v41  ;;  %v2247_v63 = vld [vmem:[#allocation55_spill] sm:$0xff]  ;;  %v2250_v39 = vld [vmem:[#allocation41_spill] sm:$0xff] }
 0x1e0   : > { %1061 = vst.msk [vmem:[%s1878_s20 + $0x10] sm:$0xff] %vm1058_vm9, %v1041_v47  ;;  %1075 = vst.msk [vmem:[%s1878_s20 + $0x80] sm:$0xff] %vm1058_vm9, %v1055_v54  ;;  %v958_v24 = vpop.permute.xlu1 %957  ;;  %v1018_v2 = vpop.permute.xlu0 %1017 }
 0x1e1   : > { %v1023_v41 = vsel %vm943_vm8, %v958_v24, %v1844_v12  ;;  %v1038_v3 = vsel %vm943_vm8, %v1018_v2, %v1853_v10  ;;  %v2240_v10 = vld [vmem:[#allocation7_spill] sm:$0xff]  ;;  %v2254_v24 = vld [vmem:[#allocation42_spill] sm:$0xff] }
 0x1e2   : > { %v1042_v61 = vmul.f32 %v1023_v41, %v847_v62  ;;  %v1057_v35 = vmul.f32 %v1038_v3, %v1811_v42  ;;  %v352_v25 = vsel %vm1722_vm5, %v2241_v59, %v2240_v10  ;;  %v2256_v3 = vld [vmem:[#allocation14_spill] sm:$0xff]  ;;  %v2260_v10 = vld [vmem:[#allocation15_spill] sm:$0xff]  ;;  %v2261_v59 = vld [vmem:[#allocation29_spill] sm:$0xff] }
 0x1e3   : > { %v454_v16 = vsel %vm1730_vm6, %v2242_v49, %v352_v25 }
 0x1e4   : > { %1062 = vst.msk [vmem:[%s1878_s20 + $0x18] sm:$0xff] %vm1058_vm9, %v1042_v61  ;;  %1077 = vst.msk [vmem:[%s1878_s20 + $0x90] sm:$0xff] %vm1058_vm9, %v1057_v35  ;;  %v966_v12 = vpop.permute.xlu1 %965  ;;  %v556_v27 = vsel %vm1737_vm7, %v2243_v23, %v454_v16  ;;  %v2258_v61 = vld [vmem:[#allocation43_spill] sm:$0xff] }
 0x1e5   : > { %v1025_v42 = vsel %vm943_vm8, %v966_v12, %v1851_v46  ;;  %v851_v33 = vmul.f32 %v1806_v7, %v556_v27  ;;  %v354_v46 = vsel %vm1722_vm5, %v2245_v52, %v2244_v15 }
 0x1e6   : > { %v1044_v5 = vmul.f32 %v1025_v42, %v849_v51  ;;  %v456_v58 = vsel %vm1730_vm6, %v2246_v45, %v354_v46  ;;  %v2262_v42 = vld [vmem:[#allocation44_spill] sm:$0xff] }
 0x1e7   : > { %v558_v7 = vsel %vm1737_vm7, %v2247_v63, %v456_v58 }
 0x1e8   : > { %1064 = vst.msk [vmem:[%s1878_s20 + $0x28] sm:$0xff] %vm1058_vm9, %v1044_v5  ;;  %v974_v57 = vpop.permute.xlu1 %973  ;;  %v853_v30 = vmul.f32 %v1816_v40, %v558_v7  ;;  %v2263_v5 = vld [vmem:[#allocation59_spill] sm:$0xff] }
 0x1e9   : > { %v1027_v26 = vsel %vm943_vm8, %v974_v57, %v1866_v4  ;;  %v356_v4 = vsel %vm1722_vm5, %v2249_v50, %v2248_v53 }
 0x1ea   : > { %v1046_v14 = vmul.f32 %v1027_v26, %v851_v33  ;;  %v458_v60 = vsel %vm1730_vm6, %v2250_v39, %v356_v4 }
 0x1eb   : > { %v560_v40 = vsel %vm1737_vm7, %v2251_v21, %v458_v60 }
 0x1ec   : > { %1066 = vst.msk [vmem:[%s1878_s20 + $0x38] sm:$0xff] %vm1058_vm9, %v1046_v14  ;;  %v982_v6 = vpop.permute.xlu1 %981  ;;  %v855_v47 = vmul.f32 %v1821_v44, %v560_v40 }
 0x1ed   : > { %v1029_v22 = vsel %vm943_vm8, %v982_v6, %v1888_v31  ;;  %v358_v31 = vsel %vm1722_vm5, %v2253_v43, %v2252_v18 }
 0x1ee   : > { %v1048_v37 = vmul.f32 %v1029_v22, %v853_v30  ;;  %v460_v2 = vsel %vm1730_vm6, %v2254_v24, %v358_v31 }
 0x1ef   : > { %v562_v44 = vsel %vm1737_vm7, %v2255_v19, %v460_v2 }
 0x1f0   : > { %1068 = vst.msk [vmem:[%s1878_s20 + $0x48] sm:$0xff] %vm1058_vm9, %v1048_v37  ;;  %v990_v54 = vpop.permute.xlu1 %989  ;;  %v857_v20 = vmul.f32 %v1826_v0, %v562_v44  ;;  %v2259_v0 = vld [vmem:[#allocation58_spill] sm:$0xff] }
 0x1f1   : > { %v1031_v62 = vsel %vm943_vm8, %v990_v54, %v1905_v34  ;;  %v360_v34 = vsel %vm1722_vm5, %v2257_v13, %v2256_v3 }
 0x1f2   : > { %v1050_v17 = vmul.f32 %v1031_v62, %v855_v47  ;;  %v462_v35 = vsel %vm1730_vm6, %v2258_v61, %v360_v34 }
 0x1f3   : > { %v564_v11 = vsel %vm1737_vm7, %v2259_v0, %v462_v35 }
 0x1f4   : > { %1070 = vst.msk [vmem:[%s1878_s20 + $0x58] sm:$0xff] %vm1058_vm9, %v1050_v17  ;;  %v998_v41 = vpop.permute.xlu1 %997  ;;  %v859_v51 = vmul.f32 %v1831_v9, %v564_v11 }
 0x1f5   : > { %v1033_v55 = vsel %vm943_vm8, %v998_v41, %v1922_v29  ;;  %v362_v29 = vsel %vm1722_vm5, %v2261_v59, %v2260_v10 }
 0x1f6   : > { %v1052_v48 = vmul.f32 %v1033_v55, %v857_v20  ;;  %v464_v49 = vsel %vm1730_vm6, %v2262_v42, %v362_v29 }
 0x1f7   : > { %v566_v9 = vsel %vm1737_vm7, %v2263_v5, %v464_v49 }
 0x1f8   : > { %1072 = vst.msk [vmem:[%s1878_s20 + $0x68] sm:$0xff] %vm1058_vm9, %v1052_v48  ;;  %v1006_v12 = vpop.permute.xlu1 %1005  ;;  %v861_v23 = vmul.f32 %v1835_v32, %v566_v9 }
 0x1f9   : > { %v1035_v25 = vsel %vm943_vm8, %v1006_v12, %v1939_v38 }
 0x1fa   : > { %v1054_v16 = vmul.f32 %v1035_v25, %v859_v51 }
 0x1fc   : > { %1074 = vst.msk [vmem:[%s1878_s20 + $0x78] sm:$0xff] %vm1058_vm9, %v1054_v16  ;;  %v1014_v27 = vpop.permute.xlu1 %1013 }
 0x1fd   : > { %v1037_v8 = vsel %vm943_vm8, %v1014_v27, %v1946_v28 }
 0x1fe   : > { %v1056_v33 = vmul.f32 %v1037_v8, %v861_v23 }
 0x200   : > { %1076 = vst.msk [vmem:[%s1878_s20 + $0x88] sm:$0xff] %vm1058_vm9, %v1056_v33 }
 0x201 PF: > { %s12_s9 = sadd.s32 1, %s1184_s9  }
 0x202   : > { %p9_p4 = scmp.ge.s32.totalorder %s12_s9, 4  }
 0x204   :  { %11 = sbr.rel (!%p9_p4) target bundleno = 1 (0x1), region = 58 }

</bundles_post_ra>
